<compile_context>
chip_gen: v7x
topology: tpu7x:2x2x1
jax: 0.10.0
libtpu: 0.0.40
codegen_flags: <defaults>
</compile_context>

<pallas_src>
import numpy as np
import jax
import jax.numpy as jnp
from jax.experimental import pallas as pl
from jax.experimental.pallas import tpu as pltpu


_SENSE_LANES = 128  # lane-dense width for the int32 which_sense output slab


# ---------------------------------------------------------------------------
# Pallas kernel: one (modal, row-tile) Sense_Mapping forward (use_mlp=True)
# ---------------------------------------------------------------------------
def sense_mapping_kernel(x_ref, w1_ref, w2_ref, w3_ref,
                         m1_ref, b1_ref, m2_ref, b2_ref, m3_ref, b3_ref,
                         emb_ref, sense_ref):
    x = x_ref[...]

    # sense_map: (Linear no-bias -> Tanh) x 3
    h = jnp.tanh(jnp.dot(x, w1_ref[...], preferred_element_type=jnp.float32))
    h = jnp.tanh(jnp.dot(h, w2_ref[...], preferred_element_type=jnp.float32))
    emb = jnp.tanh(jnp.dot(h, w3_ref[...], preferred_element_type=jnp.float32))
    emb_ref[...] = emb

    # mlp head: Dropout (identity at inference) -> (Linear + LeakyReLU(0.1)) x 3
    def leaky(v):
        return jnp.where(v >= 0, v, 0.1 * v)

    z = leaky(jnp.dot(emb, m1_ref[...], preferred_element_type=jnp.float32) + b1_ref[...])
    z = leaky(jnp.dot(z, m2_ref[...], preferred_element_type=jnp.float32) + b2_ref[...])
    z = leaky(jnp.dot(z, m3_ref[...], preferred_element_type=jnp.float32) + b3_ref[...])

    # argmax(softmax(z), dim=1) == argmax(z, dim=1): skip the softmax entirely.
    # First-occurrence argmax via iota + min (robust Mosaic lowering).
    n, k = z.shape
    col = jax.lax.broadcasted_iota(jnp.int32, (n, k), 1)
    maxv = jnp.max(z, axis=1, keepdims=True)
    cand = jnp.where(z == maxv, col, jnp.int32(k))
    which = jnp.min(cand, axis=1, keepdims=True).astype(jnp.int32)

    # lane-dense store (avoids masked vst on a width-1 output); wrapper slices col 0.
    sense_ref[...] = jnp.broadcast_to(which, sense_ref.shape)


def _pick_tile_n(n):
    for t in (512, 256, 128):
        if n % t == 0:
            return t
    return n  # small batches: whole batch per tile (full-extent block is legal)


def sense_mapping_forward_fused(x_stacked, stacked_params):
    """All modals' Sense_Mapping submodules in a single pallas_call.

    x_stacked           : [num_modals, N, token_dim] f32
    stacked_params[key] : [num_modals, ...] stacked weight / bias tensors
    returns (emb [M,N,sense_dim] f32, which_sense [M,N] int32)
    """
    num_modals, n, token_dim = x_stacked.shape
    sense_dim = stacked_params["w3"].shape[-1]
    tile_n = _pick_tile_n(n)
    grid = (num_modals, n // tile_n)

    def row_spec(feat):
        # per-(modal, row-tile) block; modal axis squeezed out of the kernel Ref
        return pl.BlockSpec((None, tile_n, feat), lambda m, i: (m, i, 0))

    def weight_spec(rows, cols):
        # VMEM-resident across row tiles (same block for every i)
        return pl.BlockSpec((None, rows, cols), lambda m, i: (m, 0, 0))

    p = stacked_params
    args = (x_stacked, p["w1"], p["w2"], p["w3"],
            p["m1"], p["b1"], p["m2"], p["b2"], p["m3"], p["b3"])
    in_specs = [row_spec(token_dim)] + [
        weight_spec(a.shape[1], a.shape[2]) for a in args[1:]
    ]

    emb, sense_slab = pl.pallas_call(
        sense_mapping_kernel,
        out_shape=(
            jax.ShapeDtypeStruct((num_modals, n, sense_dim), jnp.float32),
            jax.ShapeDtypeStruct((num_modals, n, _SENSE_LANES), jnp.int32),
        ),
        grid=grid,
        in_specs=in_specs,
        out_specs=(row_spec(sense_dim), row_spec(_SENSE_LANES)),
        compiler_params=pltpu.CompilerParams(
            dimension_semantics=("parallel", "parallel"),
            vmem_limit_bytes=32 * 1024 * 1024,  # safe on v7x's 64 MiB physical VMEM
        ),
    )(*args)

    return emb, sense_slab[:, :, 0]


# ---------------------------------------------------------------------------
# Parameter construction (deterministic, in-script)
# ---------------------------------------------------------------------------
def init_params(key, modals, k_assignment, token_dim, hid_dim, sense_dim):
    keys = jax.random.split(key, 1 + len(modals))
    params = {
        # centroids ~ U[0, 1)  (torch.rand)
        "centroids": jax.random.uniform(
            keys[0], (k_assignment[modals[0]], sense_dim), dtype=jnp.float32)
    }

    def lin(k, fan_in, fan_out):
        bound = 1.0 / np.sqrt(fan_in)
        return jax.random.uniform(k, (fan_in, fan_out), jnp.float32, -bound, bound)

    def bias(k, fan_in, fan_out):
        # PyTorch nn.Linear bias bound = 1/sqrt(in_features)
        bound = 1.0 / np.sqrt(fan_in)
        return jax.random.uniform(k, (1, fan_out), jnp.float32, -bound, bound)

    for mi, modal in enumerate(modals):
        mk = jax.random.split(keys[1 + mi], 9)
        k_senses = k_assignment[modal]
        params[modal] = {
            "w1": lin(mk[0], token_dim, hid_dim),
            "w2": lin(mk[1], hid_dim, hid_dim),
            "w3": lin(mk[2], hid_dim, sense_dim),
            "m1": lin(mk[3], sense_dim, hid_dim),
            "b1": bias(mk[4], sense_dim, hid_dim),
            "m2": lin(mk[5], hid_dim, hid_dim),
            "b2": bias(mk[6], hid_dim, hid_dim),
            "m3": lin(mk[7], hid_dim, k_senses),
            "b3": bias(mk[8], hid_dim, k_senses),
        }
    return params


# ---------------------------------------------------------------------------
# Mapping_and_Shared_Centroids forward (glue around the fused kernel)
# ---------------------------------------------------------------------------
def mapping_and_shared_centroids_forward(params, batch_embeddings, modals, k_assignment):
    centroids = jnp.tanh(params["centroids"])  # computed once, outside any loop

    # Fusing all modals into one grid-parallel pallas_call requires identical
    # per-modal shapes (true for this module: same token/hid/sense dims; the
    # example config also shares k_senses).
    k0 = k_assignment[modals[0]]
    assert all(k_assignment[m] == k0 for m in modals), \
        "fused kernel requires identical k_senses across modals"
    # TODO(synk): ragged k_assignment across modals would need one pallas_call
    # per distinct head width.
    # TODO(synk): sub_module_use_mlp=False (nearest-shared-centroid argmin
    # branch) is not implemented; this script fixes sub_module_use_mlp=True.

    wkeys = ("w1", "w2", "w3", "m1", "b1", "m2", "b2", "m3", "b3")
    x_stacked = jnp.stack([batch_embeddings[m] for m in modals], axis=0)
    stacked = {k: jnp.stack([params[m][k] for m in modals], axis=0) for k in wkeys}

    emb_all, sense_all = sense_mapping_forward_fused(x_stacked, stacked)

    # Single host transfer for the data-dependent grouping (no per-modal sync).
    sense_all_np = np.asarray(jax.device_get(sense_all))

    sense_embeddings = []
    word_class = []
    sense_class = []
    embeddings_grouped_by_sense = {}
    embeddings_dict = {}
    sense_class_dict = {}

    for mi, modal in enumerate(modals):
        _sense_embeddings = emb_all[mi]
        _sense_class = sense_all[mi]
        _word_class = jnp.full((_sense_embeddings.shape[0],), mi, dtype=jnp.int32)

        # group by sense (ragged; done on host since shapes are data-dependent)
        grouped = {}
        for i in range(k_assignment[modal]):
            idx = np.nonzero(sense_all_np[mi] == i)[0]
            grouped[i] = _sense_embeddings[idx]
        embeddings_grouped_by_sense[modal] = grouped

        sense_embeddings.append(_sense_embeddings)
        word_class.append(_word_class)
        sense_class.append(_sense_class)
        sense_class_dict[modal] = _sense_class
        embeddings_dict[modal] = _sense_embeddings

    return {
        "centroids": centroids,
        "sense_embeddings": jnp.concatenate(sense_embeddings, axis=0),
        "word_class": jnp.concatenate(word_class),
        "sense_class": jnp.concatenate(sense_class),
        "embeddings_dict": embeddings_dict,
        "sense_class_dict": sense_class_dict,
        "embeddings_grouped_by_sense": embeddings_grouped_by_sense,
    }


# ---------------------------------------------------------------------------
# Pure-JAX reference for a single Sense_Mapping (sanity check)
# ---------------------------------------------------------------------------
def _reference_sense_mapping(x, p):
    h = jnp.tanh(x @ p["w1"])
    h = jnp.tanh(h @ p["w2"])
    emb = jnp.tanh(h @ p["w3"])

    def leaky(v):
        return jnp.where(v >= 0, v, 0.1 * v)

    z = leaky(emb @ p["m1"] + p["b1"])
    z = leaky(z @ p["m2"] + p["b2"])
    z = leaky(z @ p["m3"] + p["b3"])
    dist = jax.nn.softmax(z, axis=1)
    return emb, jnp.argmax(dist, axis=1).astype(jnp.int32)


# ---------------------------------------------------------------------------
if __name__ == "__main__":
    modals = ["text", "image"]
    k_assignment = {"text": 4, "image": 4}
    token_dim, hid_dim, sense_dim = 32, 32, 16
    N = 8  # tokens per modal

    key = jax.random.PRNGKey(0)
    pkey, xkey_t, xkey_i = jax.random.split(key, 3)

    params = init_params(pkey, modals, k_assignment, token_dim, hid_dim, sense_dim)
    batch_embeddings = {
        "text": jax.random.normal(xkey_t, (N, token_dim), jnp.float32),
        "image": jax.random.normal(xkey_i, (N, token_dim), jnp.float32),
    }

    out = mapping_and_shared_centroids_forward(params, batch_embeddings, modals, k_assignment)

    jax.block_until_ready(out["sense_embeddings"])
    jax.block_until_ready(out["sense_class"])
    jax.block_until_ready(out["centroids"])

    # shape checks
    assert out["sense_embeddings"].shape == (2 * N, sense_dim)
    assert out["sense_class"].shape == (2 * N,)
    assert out["word_class"].shape == (2 * N,)
    assert out["centroids"].shape == (k_assignment[modals[0]], sense_dim)

    # numerical check vs. pure-JAX reference (softmax kept in reference; the
    # kernel skips it because argmax is invariant under softmax)
    for mi, modal in enumerate(modals):
        ref_emb, ref_which = _reference_sense_mapping(batch_embeddings[modal], params[modal])
        np.testing.assert_allclose(
            np.asarray(out["embeddings_dict"][modal]), np.asarray(ref_emb),
            rtol=1e-5, atol=1e-5)
        np.testing.assert_array_equal(
            np.asarray(out["sense_class_dict"][modal]), np.asarray(ref_which))

    print("KERNEL_OK")
</pallas_src>

<mosaic_0001>
module attributes {stable_mosaic.version = 11 : i64} {
  func.func @sense_mapping_kernel(%arg0: i32, %arg1: i32, %arg2: memref<1x8x32xf32, #tpu.memory_space<vmem>>, %arg3: memref<1x32x32xf32, #tpu.memory_space<vmem>>, %arg4: memref<1x32x32xf32, #tpu.memory_space<vmem>>, %arg5: memref<1x32x16xf32, #tpu.memory_space<vmem>>, %arg6: memref<1x16x32xf32, #tpu.memory_space<vmem>>, %arg7: memref<1x1x32xf32, #tpu.memory_space<vmem>>, %arg8: memref<1x32x32xf32, #tpu.memory_space<vmem>>, %arg9: memref<1x1x32xf32, #tpu.memory_space<vmem>>, %arg10: memref<1x32x4xf32, #tpu.memory_space<vmem>>, %arg11: memref<1x1x4xf32, #tpu.memory_space<vmem>>, %arg12: memref<1x8x16xf32, #tpu.memory_space<vmem>>, %arg13: memref<1x8x128xi32, #tpu.memory_space<vmem>>) attributes {dimension_semantics = [#tpu.dimension_semantics<parallel>, #tpu.dimension_semantics<parallel>], iteration_bounds = array<i64: 2, 1>, scalar_prefetch = 0 : i64, scratch_operands = 0 : i64, tpu.core_type = #tpu.core_type<tc>, window_params = [{transform_indices = @transform_0, window_bounds = array<i64: 1, 8, 32>}, {transform_indices = @transform_1, window_bounds = array<i64: 1, 32, 32>}, {transform_indices = @transform_2, window_bounds = array<i64: 1, 32, 32>}, {transform_indices = @transform_3, window_bounds = array<i64: 1, 32, 16>}, {transform_indices = @transform_4, window_bounds = array<i64: 1, 16, 32>}, {transform_indices = @transform_5, window_bounds = array<i64: 1, 1, 32>}, {transform_indices = @transform_6, window_bounds = array<i64: 1, 32, 32>}, {transform_indices = @transform_7, window_bounds = array<i64: 1, 1, 32>}, {transform_indices = @transform_8, window_bounds = array<i64: 1, 32, 4>}, {transform_indices = @transform_9, window_bounds = array<i64: 1, 1, 4>}, {transform_indices = @transform_10, window_bounds = array<i64: 1, 8, 16>}, {transform_indices = @transform_11, window_bounds = array<i64: 1, 8, 128>}]} {
    %c0 = arith.constant 0 : index
    %c0_0 = arith.constant 0 : index
    %c0_1 = arith.constant 0 : index
    %0 = vector.load %arg2[%c0, %c0_0, %c0_1] : memref<1x8x32xf32, #tpu.memory_space<vmem>>, vector<1x8x32xf32>
    %1 = vector.shape_cast %0 : vector<1x8x32xf32> to vector<8x32xf32>
    %c0_2 = arith.constant 0 : index
    %c0_3 = arith.constant 0 : index
    %c0_4 = arith.constant 0 : index
    %2 = vector.load %arg3[%c0_2, %c0_3, %c0_4] : memref<1x32x32xf32, #tpu.memory_space<vmem>>, vector<1x32x32xf32>
    %3 = vector.shape_cast %2 : vector<1x32x32xf32> to vector<32x32xf32>
    %cst = arith.constant dense<0.000000e+00> : vector<8x32xf32>
    %4 = tpu.matmul %1, %3, %cst {dimension_numbers = #tpu.dot_dimension_numbers<[1], [0], [0], [1], [0, 0, 1, 1], [], []>} : vector<8x32xf32>, vector<32x32xf32>, vector<8x32xf32> -> vector<8x32xf32>
    %5 = math.tanh %4 : vector<8x32xf32>
    %c0_5 = arith.constant 0 : index
    %c0_6 = arith.constant 0 : index
    %c0_7 = arith.constant 0 : index
    %6 = vector.load %arg4[%c0_5, %c0_6, %c0_7] : memref<1x32x32xf32, #tpu.memory_space<vmem>>, vector<1x32x32xf32>
    %7 = vector.shape_cast %6 : vector<1x32x32xf32> to vector<32x32xf32>
    %cst_8 = arith.constant dense<0.000000e+00> : vector<8x32xf32>
    %8 = tpu.matmul %5, %7, %cst_8 {dimension_numbers = #tpu.dot_dimension_numbers<[1], [0], [0], [1], [0, 0, 1, 1], [], []>} : vector<8x32xf32>, vector<32x32xf32>, vector<8x32xf32> -> vector<8x32xf32>
    %9 = math.tanh %8 : vector<8x32xf32>
    %c0_9 = arith.constant 0 : index
    %c0_10 = arith.constant 0 : index
    %c0_11 = arith.constant 0 : index
    %10 = vector.load %arg5[%c0_9, %c0_10, %c0_11] : memref<1x32x16xf32, #tpu.memory_space<vmem>>, vector<1x32x16xf32>
    %11 = vector.shape_cast %10 : vector<1x32x16xf32> to vector<32x16xf32>
    %cst_12 = arith.constant dense<0.000000e+00> : vector<8x16xf32>
    %12 = tpu.matmul %9, %11, %cst_12 {dimension_numbers = #tpu.dot_dimension_numbers<[1], [0], [0], [1], [0, 0, 1, 1], [], []>} : vector<8x32xf32>, vector<32x16xf32>, vector<8x16xf32> -> vector<8x16xf32>
    %13 = math.tanh %12 : vector<8x16xf32>
    %c0_13 = arith.constant 0 : index
    %c0_14 = arith.constant 0 : index
    %c0_15 = arith.constant 0 : index
    %14 = vector.load %arg12[%c0_13, %c0_14, %c0_15] : memref<1x8x16xf32, #tpu.memory_space<vmem>>, vector<1x8x16xf32>
    %15 = vector.shape_cast %14 : vector<1x8x16xf32> to vector<8x16xf32>
    %16 = vector.shape_cast %13 : vector<8x16xf32> to vector<1x8x16xf32>
    tpu.vector_store %arg12[%c0_13, %c0_14, %c0_15], %16 {strides = array<i32>} : memref<1x8x16xf32, #tpu.memory_space<vmem>>, vector<1x8x16xf32>,
    %c0_16 = arith.constant 0 : index
    %c0_17 = arith.constant 0 : index
    %c0_18 = arith.constant 0 : index
    %17 = vector.load %arg6[%c0_16, %c0_17, %c0_18] : memref<1x16x32xf32, #tpu.memory_space<vmem>>, vector<1x16x32xf32>
    %18 = vector.shape_cast %17 : vector<1x16x32xf32> to vector<16x32xf32>
    %cst_19 = arith.constant dense<0.000000e+00> : vector<8x32xf32>
    %19 = tpu.matmul %13, %18, %cst_19 {dimension_numbers = #tpu.dot_dimension_numbers<[1], [0], [0], [1], [0, 0, 1, 1], [], []>} : vector<8x16xf32>, vector<16x32xf32>, vector<8x32xf32> -> vector<8x32xf32>
    %c0_20 = arith.constant 0 : index
    %c0_21 = arith.constant 0 : index
    %c0_22 = arith.constant 0 : index
    %20 = vector.load %arg7[%c0_20, %c0_21, %c0_22] : memref<1x1x32xf32, #tpu.memory_space<vmem>>, vector<1x1x32xf32>
    %21 = vector.shape_cast %20 : vector<1x1x32xf32> to vector<1x32xf32>
    %22 = vector.broadcast %21 : vector<1x32xf32> to vector<8x32xf32>
    %23 = arith.addf %19, %22 : vector<8x32xf32>
    %cst_23 = arith.constant 0.000000e+00 : f32
    %24 = vector.broadcast %cst_23 : f32 to vector<8x32xf32>
    %25 = arith.cmpf oge, %23, %24 : vector<8x32xf32>
    %cst_24 = arith.constant 1.000000e-01 : f32
    %26 = vector.broadcast %cst_24 : f32 to vector<8x32xf32>
    %27 = arith.mulf %26, %23 : vector<8x32xf32>
    %28 = arith.select %25, %23, %27 : vector<8x32xi1>, vector<8x32xf32>
    %c0_25 = arith.constant 0 : index
    %c0_26 = arith.constant 0 : index
    %c0_27 = arith.constant 0 : index
    %29 = vector.load %arg8[%c0_25, %c0_26, %c0_27] : memref<1x32x32xf32, #tpu.memory_space<vmem>>, vector<1x32x32xf32>
    %30 = vector.shape_cast %29 : vector<1x32x32xf32> to vector<32x32xf32>
    %cst_28 = arith.constant dense<0.000000e+00> : vector<8x32xf32>
    %31 = tpu.matmul %28, %30, %cst_28 {dimension_numbers = #tpu.dot_dimension_numbers<[1], [0], [0], [1], [0, 0, 1, 1], [], []>} : vector<8x32xf32>, vector<32x32xf32>, vector<8x32xf32> -> vector<8x32xf32>
    %c0_29 = arith.constant 0 : index
    %c0_30 = arith.constant 0 : index
    %c0_31 = arith.constant 0 : index
    %32 = vector.load %arg9[%c0_29, %c0_30, %c0_31] : memref<1x1x32xf32, #tpu.memory_space<vmem>>, vector<1x1x32xf32>
    %33 = vector.shape_cast %32 : vector<1x1x32xf32> to vector<1x32xf32>
    %34 = vector.broadcast %33 : vector<1x32xf32> to vector<8x32xf32>
    %35 = arith.addf %31, %34 : vector<8x32xf32>
    %cst_32 = arith.constant 0.000000e+00 : f32
    %36 = vector.broadcast %cst_32 : f32 to vector<8x32xf32>
    %37 = arith.cmpf oge, %35, %36 : vector<8x32xf32>
    %cst_33 = arith.constant 1.000000e-01 : f32
    %38 = vector.broadcast %cst_33 : f32 to vector<8x32xf32>
    %39 = arith.mulf %38, %35 : vector<8x32xf32>
    %40 = arith.select %37, %35, %39 : vector<8x32xi1>, vector<8x32xf32>
    %c0_34 = arith.constant 0 : index
    %c0_35 = arith.constant 0 : index
    %c0_36 = arith.constant 0 : index
    %41 = vector.load %arg10[%c0_34, %c0_35, %c0_36] : memref<1x32x4xf32, #tpu.memory_space<vmem>>, vector<1x32x4xf32>
    %42 = vector.shape_cast %41 : vector<1x32x4xf32> to vector<32x4xf32>
    %cst_37 = arith.constant dense<0.000000e+00> : vector<8x4xf32>
    %43 = tpu.matmul %40, %42, %cst_37 {dimension_numbers = #tpu.dot_dimension_numbers<[1], [0], [0], [1], [0, 0, 1, 1], [], []>} : vector<8x32xf32>, vector<32x4xf32>, vector<8x4xf32> -> vector<8x4xf32>
    %c0_38 = arith.constant 0 : index
    %c0_39 = arith.constant 0 : index
    %c0_40 = arith.constant 0 : index
    %44 = vector.load %arg11[%c0_38, %c0_39, %c0_40] : memref<1x1x4xf32, #tpu.memory_space<vmem>>, vector<1x1x4xf32>
    %45 = vector.shape_cast %44 : vector<1x1x4xf32> to vector<1x4xf32>
    %46 = vector.broadcast %45 : vector<1x4xf32> to vector<8x4xf32>
    %47 = arith.addf %43, %46 : vector<8x4xf32>
    %cst_41 = arith.constant 0.000000e+00 : f32
    %48 = vector.broadcast %cst_41 : f32 to vector<8x4xf32>
    %49 = arith.cmpf oge, %47, %48 : vector<8x4xf32>
    %cst_42 = arith.constant 1.000000e-01 : f32
    %50 = vector.broadcast %cst_42 : f32 to vector<8x4xf32>
    %51 = arith.mulf %50, %47 : vector<8x4xf32>
    %52 = arith.select %49, %47, %51 : vector<8x4xi1>, vector<8x4xf32>
    %53 = tpu.iota {dimensions = array<i32: 1>} : vector<8x4xi32>
    %cst_43 = arith.constant dense<0xFF800000> : vector<8xf32>
    %54 = vector.multi_reduction <maximumf>, %52, %cst_43 [1] : vector<8x4xf32> to vector<8xf32>
    %55 = vector.shape_cast %54 : vector<8xf32> to vector<8x1xf32>
    %56 = vector.broadcast %55 : vector<8x1xf32> to vector<8x4xf32>
    %57 = arith.cmpf oeq, %52, %56 : vector<8x4xf32>
    %c4_i32 = arith.constant 4 : i32
    %58 = vector.broadcast %c4_i32 : i32 to vector<8x4xi32>
    %59 = arith.select %57, %53, %58 : vector<8x4xi1>, vector<8x4xi32>
    %cst_44 = arith.constant dense<2147483647> : vector<8xi32>
    %60 = vector.multi_reduction <minsi>, %59, %cst_44 [1] : vector<8x4xi32> to vector<8xi32>
    %61 = vector.shape_cast %60 : vector<8xi32> to vector<8x1xi32>
    %62 = vector.shape_cast %61 : vector<8x1xi32> to vector<8x1xi32>
    %63 = vector.broadcast %62 : vector<8x1xi32> to vector<8x128xi32>
    %c0_45 = arith.constant 0 : index
    %c0_46 = arith.constant 0 : index
    %c0_47 = arith.constant 0 : index
    %64 = vector.load %arg13[%c0_45, %c0_46, %c0_47] : memref<1x8x128xi32, #tpu.memory_space<vmem>>, vector<1x8x128xi32>
    %65 = vector.shape_cast %64 : vector<1x8x128xi32> to vector<8x128xi32>
    %66 = vector.shape_cast %63 : vector<8x128xi32> to vector<1x8x128xi32>
    tpu.vector_store %arg13[%c0_45, %c0_46, %c0_47], %66 {strides = array<i32>} : memref<1x8x128xi32, #tpu.memory_space<vmem>>, vector<1x8x128xi32>,
    return
  }
  func.func @transform_0(%arg0: i32, %arg1: i32) -> (i32, i32, i32) {
    %c0_i32 = arith.constant 0 : i32
    %c0_i32_0 = arith.constant 0 : i32
    return %arg0, %arg1, %c0_i32 : i32, i32, i32
  }
  func.func @transform_1(%arg0: i32, %arg1: i32) -> (i32, i32, i32) {
    %c0_i32 = arith.constant 0 : i32
    %c0_i32_0 = arith.constant 0 : i32
    %c0_i32_1 = arith.constant 0 : i32
    return %arg0, %c0_i32, %c0_i32_0 : i32, i32, i32
  }
  func.func @transform_2(%arg0: i32, %arg1: i32) -> (i32, i32, i32) {
    %c0_i32 = arith.constant 0 : i32
    %c0_i32_0 = arith.constant 0 : i32
    %c0_i32_1 = arith.constant 0 : i32
    return %arg0, %c0_i32, %c0_i32_0 : i32, i32, i32
  }
  func.func @transform_3(%arg0: i32, %arg1: i32) -> (i32, i32, i32) {
    %c0_i32 = arith.constant 0 : i32
    %c0_i32_0 = arith.constant 0 : i32
    %c0_i32_1 = arith.constant 0 : i32
    return %arg0, %c0_i32, %c0_i32_0 : i32, i32, i32
  }
  func.func @transform_4(%arg0: i32, %arg1: i32) -> (i32, i32, i32) {
    %c0_i32 = arith.constant 0 : i32
    %c0_i32_0 = arith.constant 0 : i32
    %c0_i32_1 = arith.constant 0 : i32
    return %arg0, %c0_i32, %c0_i32_0 : i32, i32, i32
  }
  func.func @transform_5(%arg0: i32, %arg1: i32) -> (i32, i32, i32) {
    %c0_i32 = arith.constant 0 : i32
    %c0_i32_0 = arith.constant 0 : i32
    %c0_i32_1 = arith.constant 0 : i32
    return %arg0, %c0_i32, %c0_i32_0 : i32, i32, i32
  }
  func.func @transform_6(%arg0: i32, %arg1: i32) -> (i32, i32, i32) {
    %c0_i32 = arith.constant 0 : i32
    %c0_i32_0 = arith.constant 0 : i32
    %c0_i32_1 = arith.constant 0 : i32
    return %arg0, %c0_i32, %c0_i32_0 : i32, i32, i32
  }
  func.func @transform_7(%arg0: i32, %arg1: i32) -> (i32, i32, i32) {
    %c0_i32 = arith.constant 0 : i32
    %c0_i32_0 = arith.constant 0 : i32
    %c0_i32_1 = arith.constant 0 : i32
    return %arg0, %c0_i32, %c0_i32_0 : i32, i32, i32
  }
  func.func @transform_8(%arg0: i32, %arg1: i32) -> (i32, i32, i32) {
    %c0_i32 = arith.constant 0 : i32
    %c0_i32_0 = arith.constant 0 : i32
    %c0_i32_1 = arith.constant 0 : i32
    return %arg0, %c0_i32, %c0_i32_0 : i32, i32, i32
  }
  func.func @transform_9(%arg0: i32, %arg1: i32) -> (i32, i32, i32) {
    %c0_i32 = arith.constant 0 : i32
    %c0_i32_0 = arith.constant 0 : i32
    %c0_i32_1 = arith.constant 0 : i32
    return %arg0, %c0_i32, %c0_i32_0 : i32, i32, i32
  }
  func.func @transform_10(%arg0: i32, %arg1: i32) -> (i32, i32, i32) {
    %c0_i32 = arith.constant 0 : i32
    %c0_i32_0 = arith.constant 0 : i32
    return %arg0, %arg1, %c0_i32 : i32, i32, i32
  }
  func.func @transform_11(%arg0: i32, %arg1: i32) -> (i32, i32, i32) {
    %c0_i32 = arith.constant 0 : i32
    %c0_i32_0 = arith.constant 0 : i32
    return %arg0, %arg1, %c0_i32 : i32, i32, i32
  }
}

</mosaic_0001>

<bundles_post_ra>
// kernel: tpu_custom_call.1
= control target key start
LH: loop header
LB: loop body
LE: loop exit
PB: predicated region body
PF: predicated region fallthrough
CT: control target
= control target key end

     0   :  { %s2224_s0 = inlined_call_operand.hbm [shape: f32[2,8,32], index: 0, kind: input, shape index: {}]   ;;  %s2225_s1 = inlined_call_operand.vmem [shape: f32[2,32,32], index: 1, kind: input, shape index: {}]   ;;  %s2226_s2 = inlined_call_operand.vmem [shape: f32[2,32,32], index: 2, kind: input, shape index: {}]   ;;  %s2227_s3 = inlined_call_operand.vmem [shape: f32[2,32,16], index: 3, kind: input, shape index: {}]   ;;  %s2228_s4 = inlined_call_operand.vmem [shape: f32[2,16,32], index: 4, kind: input, shape index: {}]   ;;  %s2229_s5 = inlined_call_operand.vmem [shape: f32[2,1,32], index: 5, kind: input, shape index: {}]   ;;  %s2230_s6 = inlined_call_operand.hbm [shape: f32[2,32,32], index: 6, kind: input, shape index: {}]   ;;  %s2231_s7 = inlined_call_operand.vmem [shape: f32[2,1,32], index: 7, kind: input, shape index: {}]   ;;  %s2232_s8 = inlined_call_operand.vmem [shape: f32[2,32,4], index: 8, kind: input, shape index: {}]   ;;  %s2233_s9 = inlined_call_operand.vmem [shape: f32[2,1,4], index: 9, kind: input, shape index: {}]   ;;  %s2234_s10 = inlined_call_operand.hbm [shape: f32[2,8,16], index: 10, kind: output, shape index: {0}]   ;;  %s2235_s11 = inlined_call_operand.hbm [shape: s32[2,8,128], index: 11, kind: output, shape index: {1}]  }
   0x1   :  { %2242 = sst [smem:[#allocation19_spill]] %s2224_s0 }
   0x2   :  { %17 = vsyncpa [#allocation3], 0 }
   0x3   :  { %19 = vsyncpa [#allocation3 + $0x1], 0 }
   0x4   :  { %20 = vsyncpa [#allocation6], 0 }
   0x5   :  { %22 = vsyncpa [#allocation6 + $0x1], 0 }
   0x6   :  { %23 = vsyncpa [#allocation4], 0 }
   0x7   :  { %25 = vsyncpa [#allocation4 + $0x1], 0 }
   0x8   :  { %26 = vsyncpa [#allocation9], 0 }
   0x9   :  { %28 = vsyncpa [#allocation9 + $0x1], 0  ;;  %s1892_s17 = smov 0   ;;  %s1894_s18 = smov 0  }
   0xa   :  { %s1896_s19 = smov 0   ;;  %s1898_s20 = smov 0  }
   0xb   :  { %s1900_s21 = smov 0   ;;  %s1902_s22 = smov 0  }
   0xc LB: > { %2243 = sst [smem:[#allocation14_spill]] %s1809_s19  ;;  %s1392_s23 = sadd.s32 4294967295, %s1821_s22   ;;  %s1821_s22 = sphi %s1902_s22, %s34_s22   ;;  %s1817_s21 = sphi %s1900_s21, %s2265_s21   ;;  %s1813_s20 = sphi %s1898_s20, %s2264_s20   ;;  %s1809_s19 = sphi %s1896_s19, %s2263_s19   ;;  %s1805_s18 = sphi %s1894_s18, %s2267_s18   ;;  %s1801_s17 = sphi %s1892_s17, %s2266_s17  }
   0xd   : > { %2244 = sst [smem:[#allocation15_spill]] %s1817_s21  ;;  %s1393_s24 = sadd.s32 4294967294, %s1821_s22  }
   0xe   : > { %s46_s25 = sadd.s32 1, %s1817_s21  ;;  %s55_s26 = sadd.s32 1, %s1809_s19 }
   0xf   : > { %p48_p0 = scmp.ge.s32.totalorder %s46_s25, 2  ;;  %p62_p1 = scmp.ne.s32.totalorder %s1809_s19, %s1805_s18 }
  0x10   : > { %p63_p2 = scmp.eq.s32.totalorder %s1821_s22, 0  ;;  %p68_p3 = scmp.ne.s32.totalorder %s1805_s18, %s1801_s17 }
  0x11   : > { %s2269_s25 = smov (%p48_p0, %s46_s25), 0  ;;  %p69_p5 = scmp.eq.s32.totalorder %s1392_s23, 0 }
  0x12   : > { %2245 = sst [smem:[#allocation16_spill]] %s2269_s25  ;;  %p1933_p4 = por %p63_p2, %p62_p1 }
  0x13   : > { %s50_s28 = ssub.s32 %s1817_s21, %s2269_s25  ;;  %p328_p6 = scmp.eq.s32.totalorder %s1392_s23, 1 }
  0x14   : > { %p53_p7 = scmp.eq.s32.totalorder %s50_s28, 0  ;;  %p1939_p8 = por %p69_p5, %p68_p3 }
  0x15   : > { %p1943_p9 = por %p328_p6, %p62_p1  ;;  %p334_p10 = scmp.eq.s32.totalorder %s1393_s24, 1 }
  0x16   : > { %s2247_s29 = scalar_select %p1939_p8, 1, 0 }
  0x17   : > { %s2248_s30 = scalar_select %p1943_p9, 1, 0 }
  0x18   : > { %s1948_s12 = scalar_select %p53_p7, %s1809_s19, %s55_s26  }
  0x19   : > { %p1950_p11 = por %p334_p10, %p68_p3  ;;  %p1582_p13 = scmp.lt.s32.totalorder %s1821_s22, 2 }
  0x1a   : > { %2249 = sst [smem:[#allocation17_spill]] %s1948_s12  ;;  %s1957_s14 = sand.u32 1, %s1809_s19  }
  0x1b   : > { %s2250_s13 = scalar_select %p1950_p11, 1, 0 }
  0x1c   : > { %s1396_s15 = sshll.u32 %s1957_s14, 3  ;;  %s1397_s16 = sshll.u32 %s1817_s21, 7 }
  0x1d   : > { %2251 = sst [smem:[#allocation18_spill]] %s2250_s13  ;;  %s2252_s0 = sld [smem:[#allocation19_spill]] }
  0x1e   : > { %s386_s24 = scalar_lea.vmem [#allocation2], %s1396_s15  ;;  %p1970_p0 = pnand %p1582_p13, %p1933_p4 }
  0x1f   : > { %s394_s26 = sshll.u32 %s386_s24, 4  ;;  %s383_s23 = scalar_lea.sflag [#allocation3], %s1957_s14  ;;  %s1966_s26 = int_to_ptr.vmem [resolvable:$true] %s394_s26 }
  0x20   : > { %p1645_p5 = pneg %p1970_p0 }
  0x23   : > { %s1964_s25 = scalar_lea.hbm %s2252_s0, %s1397_s16  ;;  %s1648_s27 = scalar_lea.hbm %s2252_s0, 256 }
  0x24   : > { %s1643_s16 = scalar_lea.hbm %s1964_s25, 128  ;;  %p1649_p4 = scmp.lt.u32.totalorder %s1964_s25, %s2252_s0 }
  0x25   : > { %p1644_p3 = scmp.ne.s32.totalorder %s1964_s25, %s1643_s16  ;;  %p1650_p10 = scmp.lt.u32.totalorder %s1648_s27, %s1643_s16 }
  0x26   : > { %p1652_p12 = scmp.lt.u32.totalorder %s1643_s16, %s1964_s25 }
  0x27   : > { %p1646_p6 = pnand %p1645_p5, %p1644_p3  ;;  %p1651_p13 = por %p1650_p10, %p1649_p4 }
  0x29   : > { %p1647_p7 = pneg %p1646_p6  ;;  %p1653_p1 = por %p1652_p12, %p1651_p13 }
  0x2b   : > { %p1654_p2 = pnand %p1653_p1, %p1647_p7 }
  0x2d   : > { %1657 = shalt.err (!%p1654_p2)
}
  0x2e   : > { %s1658_s13 = scalar_lea.vmem %s1966_s26, 128  ;;  %s1823_s15 = smov [#allocation2]  }
  0x2f   : > { %p1659_p3 = scmp.ne.s32.totalorder %s1966_s26, %s1658_s13  ;;  %s1663_s28 = sshll.u32 %s1823_s15, 4  ;;  %s1664_s28 = int_to_ptr.vmem [resolvable:$false] %s1663_s28 }
  0x30   : > { %s1665_s19 = scalar_lea.vmem %s1664_s28, 256  ;;  %p1666_p9 = scmp.lt.s32.totalorder %s1966_s26, %s1664_s28 }
  0x31   : > { %p1661_p6 = pnand %p1659_p3, %p1645_p5  ;;  %p1667_p4 = scmp.lt.s32.totalorder %s1665_s19, %s1658_s13 }
  0x33   : > { %p1662_p11 = pneg %p1661_p6  ;;  %p1668_p10 = por %p1667_p4, %p1666_p9 }
  0x35   : > { %p1669_p12 = pnand %p1668_p10, %p1662_p11 }
  0x37   : > { %1672 = shalt.err (!%p1669_p12)
}
  0x38   : > { %1571 = dma.hbm_to_vmem [thread:$0]  (!%p1970_p0), %s1964_s25, 128, %s1966_s26, %s383_s23  }
  0x39   : > { %p2254_p1 = scmp.lt.s32.totalorder %s1821_s22, 3  ;;  %p2255_p2 = scmp.ge.s32.totalorder %s1821_s22, 1 }
  0x3a   : > { %s1398_s13 = sshll.u32 %s1957_s14, 5  ;;  %s1431_s27 = sshll.u32 %s1817_s21, 9 }
  0x3b   : > { %p2006_p7 = pnand %p2255_p2, %p2254_p1  ;;  %s2015_s28 = scalar_lea.hbm %s2230_s6, %s1431_s27 }
  0x3c   : > { %s443_s19 = scalar_lea.vmem [#allocation5], %s1398_s13  ;;  %s440_s25 = scalar_lea.sflag [#allocation6], %s1957_s14 }
  0x3d   : > { %s450_s0 = sshll.u32 %s443_s19, 4  ;;  %s1673_s26 = scalar_lea.hbm %s2015_s28, 512  ;;  %s2017_s0 = int_to_ptr.vmem [resolvable:$true] %s450_s0 }
  0x3e   : > { %p1674_p9 = scmp.ne.s32.totalorder %s2015_s28, %s1673_s26  ;;  %s1678_s27 = scalar_lea.hbm %s2230_s6, 1024 }
  0x3f   : > { %p1679_p3 = scmp.lt.u32.totalorder %s2015_s28, %s2230_s6  ;;  %p1680_p6 = scmp.lt.u32.totalorder %s1678_s27, %s1673_s26 }
  0x40   : > { %p1676_p11 = pnand %p1674_p9, %p1645_p5  ;;  %p1682_p10 = scmp.lt.u32.totalorder %s1673_s26, %s2015_s28 }
  0x41   : > { %p1681_p4 = por %p1680_p6, %p1679_p3 }
  0x42   : > { %p1677_p13 = pneg %p1676_p11 }
  0x43   : > { %p1683_p12 = por %p1682_p10, %p1681_p4 }
  0x45   : > { %p1684_p1 = pnand %p1683_p12, %p1677_p13 }
  0x47   : > { %1687 = shalt.err (!%p1684_p1)
}
  0x48   : > { %s1688_s13 = scalar_lea.vmem %s2017_s0, 512  ;;  %s1824_s21 = smov [#allocation5]  }
  0x49   : > { %p1689_p2 = scmp.ne.s32.totalorder %s2017_s0, %s1688_s13  ;;  %s1693_s19 = sshll.u32 %s1824_s21, 4  ;;  %s1694_s19 = int_to_ptr.vmem [resolvable:$false] %s1693_s19 }
  0x4a   : > { %s1695_s23 = scalar_lea.vmem %s1694_s19, 1024  ;;  %p1696_p8 = scmp.lt.s32.totalorder %s2017_s0, %s1694_s19 }
  0x4b   : > { %p1691_p9 = pnand %p1689_p2, %p1645_p5  ;;  %p1697_p3 = scmp.lt.s32.totalorder %s1695_s23, %s1688_s13 }
  0x4d   : > { %p1692_p11 = pneg %p1691_p9  ;;  %p1698_p6 = por %p1697_p3, %p1696_p8 }
  0x4f   : > { %p1699_p4 = pnand %p1698_p6, %p1692_p11 }
  0x51   : > { %1702 = shalt.err (!%p1699_p4)
}
  0x52   : > { %s1825_s26 = smov 128   ;;  %s1826_s27 = smov 8  }
  0x53   : > { %1574 = dma.hbm_to_vmem [thread:$0]  (!%p1970_p0), %s2015_s28, 512, %s2017_s0, %s440_s25, %s1825_s26, %s1825_s26, %s1826_s27  }
  0x54   : > { %482 = sbr.rel (%p2006_p7) target bundleno = 1885 (0x75d), region = 60  ;;  %s2048_s24 = sand.u32 (!%p2006_p7), 1, %s1805_s18  }
  0x55   : > { %s2051_s15 = sshll.u32 (!%p2006_p7), %s2048_s24, 3  ;;  %s485_s13 = scalar_lea.sflag (!%p2006_p7), [#allocation3], %s2048_s24 }
  0x56   : > { %s488_s21 = scalar_lea.vmem (!%p2006_p7), [#allocation2], %s2051_s15  ;;  %p2257_p8 = scmp.ne.s32.totalorder (!%p2006_p7), %s2247_s29, 0 }
  0x5b   : > { %1784 = dma.done.wait (%p2257_p8), %s485_s13, 128  }
  0x5c   : > { %1786 = vsyncadd (%p2257_p8), %s485_s13, 4294967168  ;;  %s1403_s0 = sshll.u32 %s2048_s24, 5  ;;  %s494_s12 = scalar_lea.sflag [#allocation6], %s2048_s24 }
  0x5d   : > { %s2061_s14 = scalar_lea.vmem [#allocation5], %s1403_s0 }
  0x5e   : > { %1788 = dma.done.wait (%p2257_p8), %s494_s12, 512  }
  0x5f   : > { %1790 = vsyncadd (%p2257_p8), %s494_s12, 4294966784  ;;  %p580_p0 = scmp.lt.s32.totalorder %s1813_s20, 1  ;;  %v1827_v0 = vmov 0.0|0.0   ;;  %vm1828_vm0 = vmmov 0   ;;  %v1829_v1 = vmov 0.0   ;;  %v614_v8 = vld [vmem:[%s488_s21] sm:$0xff] }
  0x60   : > { %1527 = vmatprep.subr.bf16.mxu0 %v1827_v0  ;;  %1473 = vmatprep.mubr.msk.f32.mxu0 %vm1828_vm0, %v1829_v1  ;;  %vm619_vm1 = vcmask 261120   ;;  %v937_v32 = vld [vmem:[%s2061_s14] sm:$0xff]  ;;  %v938_v33 = vld [vmem:[%s2061_s14 + $0x8] sm:$0xff]  ;;  %vm850_vm2 = vcmask 130048   ;;  %s572_s23 = scalar_lea.vmem [#allocation7], %s2051_s15  ;;  %v939_v36 = vld [vmem:[%s2061_s14 + $0x10] sm:$0xff] }
  0x61   : > { %s2072_s16 = scalar_select %p580_p0, %s1813_s20, 1  ;;  %1533 = vmatprep.subr.bf16.mxu1 %v1827_v0  ;;  %1484 = vmatprep.mubr.msk.f32.mxu1 %vm1828_vm0, %v1829_v1  ;;  %v1549_v34 = vpack.c.bf16 %v938_v33, %v937_v32  ;;  %v940_v37 = vld [vmem:[%s2061_s14 + $0x18] sm:$0xff]  ;;  %vm1113_vm6 = vcmask 31744  }
  0x62   : > { %v1552_v38 = vpack.c.bf16 %v940_v37, %v939_v36  ;;  %p2258_p7 = scmp.ne.s32.totalorder %s2248_s30, 0 }
  0x63   : > { %s2078_s29 = sshll.u32 %s2072_s16, 5  ;;  %s1435_s12 = sshll.u32 %s2072_s16, 4 }
  0x64   : > { %s584_s19 = scalar_lea.vmem %s2225_s1, %s2078_s29  ;;  %s589_s27 = scalar_lea.vmem %s2226_s2, %s2078_s29 }
  0x65   : > { %v615_v2 = vld [vmem:[%s584_s19] sm:$0xff]  ;;  %v616_v3 = vld [vmem:[%s584_s19 + $0x8] sm:$0xff]  ;;  %v617_v4 = vld [vmem:[%s584_s19 + $0x10] sm:$0xff]  ;;  %s594_s0 = scalar_lea.vmem %s2227_s3, %s2078_s29  ;;  %s610_s13 = scalar_lea.vmem %s2232_s8, %s2078_s29 }
  0x66   : > { %v1528_v5 = vpack.c.bf16 %v616_v3, %v615_v2  ;;  %v618_v6 = vld [vmem:[%s584_s19 + $0x18] sm:$0xff]  ;;  %v694_v9 = vld [vmem:[%s589_s27] sm:$0xff]  ;;  %v695_v10 = vld [vmem:[%s589_s27 + $0x8] sm:$0xff]  ;;  %s599_s19 = scalar_lea.vmem %s2228_s4, %s1435_s12  ;;  %s602_s12 = scalar_lea.vmem %s2229_s5, %s2072_s16 }
  0x67   : > { %v1531_v7 = vpack.c.bf16 %v618_v6, %v617_v4  ;;  %v696_v11 = vld [vmem:[%s589_s27 + $0x10] sm:$0xff]  ;;  %v1534_v12 = vpack.c.bf16 %v695_v10, %v694_v9  ;;  %v697_v13 = vld [vmem:[%s589_s27 + $0x18] sm:$0xff]  ;;  %v772_v18 = vld [vmem:[%s594_s0] sm:$0xff]  ;;  %s605_s28 = scalar_lea.vmem %s2231_s7, %s2072_s16  ;;  %s613_s26 = scalar_lea.vmem %s2233_s9, %s2072_s16 }
  0x68   : > { %1529 = vmatpush3.bf16.msra.mxu0 %v1528_v5  ;;  %v1537_v14 = vpack.c.bf16 %v697_v13, %v696_v11  ;;  %v773_v19 = vld [vmem:[%s594_s0 + $0x8] sm:$0xff]  ;;  %v774_v20 = vld [vmem:[%s594_s0 + $0x10] sm:$0xff]  ;;  %v775_v22 = vld [vmem:[%s594_s0 + $0x18] sm:$0xff]  ;;  %s1427_s16 = sshll.u32 %s1813_s20, 7  ;;  %s1155_s0 = sshll.u32 %s572_s23, 4  ;;  %s1156_s0 = int_to_ptr.vmem [resolvable:$true] %s1155_s0 }
  0x69   : > { %1530 = vmatprep.subr.bf16.mxu0 %v1827_v0  ;;  %1535 = vmatpush3.bf16.msra.mxu1 %v1534_v12  ;;  %v1540_v21 = vpack.c.bf16 %v773_v19, %v772_v18  ;;  %v1543_v23 = vpack.c.bf16 %v775_v22, %v774_v20  ;;  %v852_v27 = vld [vmem:[%s599_s19] sm:$0xff]  ;;  %v853_v28 = vld [vmem:[%s599_s19 + $0x8] sm:$0xff]  ;;  %v1026_v48 = vld [vmem:[%s610_s13 + $0x10] sm:$0xff]  ;;  %s2147_s21 = scalar_lea.hbm %s2234_s10, %s1427_s16  ;;  %s1703_s14 = scalar_lea.vmem %s1156_s0, 128 }
  0x6a   : > { %1536 = vmatprep.subr.bf16.mxu1 %v1827_v0  ;;  %v1546_v29 = vpack.c.bf16 %v853_v28, %v852_v27  ;;  %v1024_v39 = vld [vmem:[%s610_s13] sm:$0xff]  ;;  %v1025_v40 = vld [vmem:[%s610_s13 + $0x8] sm:$0xff]  ;;  %v1027_v49 = vld [vmem:[%s610_s13 + $0x18] sm:$0xff]  ;;  %p1704_p5 = scmp.ne.s32.totalorder %s1156_s0, %s1703_s14  ;;  %s1830_s29 = smov [#allocation7]  }
  0x6b   : > { %v1555_v41 = vpack.c.bf16 %v1025_v40, %v1024_v39  ;;  %v1419_v42 = vld [vmem:[%s602_s12] ss:$0 sm:$0xff]  ;;  %v1558_v50 = vpack.c.bf16 %v1027_v49, %v1026_v48  ;;  %s1136_s12 = scalar_lea.sflag [#allocation4], %s2048_s24 }
  0x6c   : > { %1532 = vmatpush3.bf16.msra.mxu0 %v1531_v7  ;;  %v1421_v51 = vld [vmem:[%s605_s28] ss:$0 sm:$0xff]  ;;  %p1705_p13 = pnand %p1704_p5, %p2258_p7  ;;  %s1707_s28 = sshll.u32 %s1830_s29, 4  ;;  %s1708_s28 = int_to_ptr.vmem [resolvable:$false] %s1707_s28 }
  0x6d   : > { %1539 = vmatprep.subr.bf16.mxu0 %v1827_v0  ;;  %1538 = vmatpush3.bf16.msra.mxu1 %v1537_v14  ;;  %v1423_v57 = vld [vmem:[%s613_s26] ss:$0 sm:$0xff]  ;;  %s1709_s25 = scalar_lea.vmem %s1708_s28, 256  ;;  %p1710_p12 = scmp.lt.s32.totalorder %s1156_s0, %s1708_s28 }
  0x6e   : > { %1545 = vmatprep.subr.bf16.mxu1 %v1827_v0  ;;  %p1706_p10 = pneg %p1705_p13  ;;  %p1711_p1 = scmp.lt.s32.totalorder %s1709_s25, %s1703_s14 }
  0x6f   : > { %1474 = vmatmul.mubr.msk.f32.vlgmr.msra.gmra.mrb[0].mxu0 %vm619_vm1, %v614_v8 }
  0x70   : > { %1495 = vmatprep.mubr.msk.f32.mxu0 %vm1828_vm0, %v1829_v1  ;;  %1541 = vmatpush3.bf16.msra.mxu0 %v1540_v21  ;;  %p1712_p2 = por %p1711_p1, %p1710_p12 }
  0x71   : > { %1542 = vmatprep.subr.bf16.mxu0 %v1827_v0 }
  0x72   : > { %p1713_p9 = pnand %p1712_p2, %p1706_p10 }
  0x74   : > { %1544 = vmatpush3.bf16.msra.mxu0 %v1543_v23 }
  0x75   : > { %1554 = vmatprep.subr.bf16.mxu0 %v1827_v0 }
 0x142   : > { %v689_v15 = vpop.f32.mrb[0].mxu0 }
 0x143   : > { %1637 = vtanh.f32 %v689_v15  ;;  %v1475_v16 = vpop.f32.mrb[1].mxu0 }
 0x14d   : > { %v1638_v17 = vpop.eup %1637 }
 0x14e   : > { %1485 = vmatmul.mubr.msk.f32.vlgmr.msra.gmra.mrb[0].mxu1 %vm619_vm1, %v1638_v17 }
 0x14f   : > { %1502 = vmatprep.mubr.msk.f32.mxu1 %vm1828_vm0, %v1829_v1  ;;  %1547 = vmatpush3.bf16.msra.mxu1 %v1546_v29 }
 0x150   : > { %1548 = vmatprep.subr.bf16.mxu1 %v1827_v0 }
 0x221   : > { %v767_v24 = vpop.f32.mrb[0].mxu1 }
 0x222   : > { %1639 = vtanh.f32 %v767_v24  ;;  %v1486_v25 = vpop.f32.mrb[1].mxu1 }
 0x22c   : > { %v1640_v26 = vpop.eup %1639 }
 0x22d   : > { %1496 = vmatmul.mubr.msk.f32.vlgmr.msra.gmra.mrb[2].mxu0 %vm619_vm1, %v1640_v26 }
 0x22e   : > { %1524 = vmatprep.mubr.msk.f32.mxu0 %vm1828_vm0, %v1829_v1  ;;  %1556 = vmatpush3.bf16.msra.mxu0 %v1555_v41 }
 0x22f   : > { %1557 = vmatprep.subr.bf16.mxu0 %v1827_v0 }
 0x232   : > { %1559 = vmatpush3.bf16.msra.mxu0 %v1558_v50 }
 0x300   : > { %v845_v30 = vpop.f32.mrb[2].mxu0 }
 0x301   : > { %1641 = vtanh.f32 %v845_v30  ;;  %v1497_v31 = vpop.f32.mrb[3].mxu0 }
 0x30b   : > { %v1642_v35 = vpop.eup %1641 }
 0x30c   : > { %1503 = vmatmul.mubr.msk.f32.vlgmr.msra.gmra.mrb[2].mxu1 %vm850_vm2, %v1642_v35  ;;  %851 = vst.msk [vmem:[%s572_s23] sm:$0xff] %vm850_vm2, %v1642_v35 }
 0x30d   : > { %1550 = vmatpush3.bf16.msra.mxu1 %v1549_v34  ;;  %1513 = vmatprep.mubr.msk.f32.mxu1 %vm1828_vm0, %v1829_v1 }
 0x30e   : > { %1551 = vmatprep.subr.bf16.mxu1 %v1827_v0  ;;  %v1111_v0 = vlaneseq }
 0x310   : > { %v1112_v1 = vand.u32 127, %v1111_v0 }
 0x311   : > { %1553 = vmatpush3.bf16.msra.mxu1 %v1552_v38 }
 0x3df   : > { %v930_v43 = vpop.f32.mrb[2].mxu1 }
 0x3e0   : > { %v931_v44 = vadd.f32 %v1419_v42, %v930_v43  ;;  %v1504_v45 = vpop.f32.mrb[3].mxu1 }
 0x3e2   : > { %vm934_vm3 = vcmp.ge.f32.partialorder %v931_v44, 0.0  ;;  %v935_v46 = vmul.f32 0.1, %v931_v44 }
 0x3e4   : > { %v936_v47 = vsel %vm934_vm3, %v931_v44, %v935_v46 }
 0x3e5   : > { %1514 = vmatmul.mubr.msk.f32.vlgmr.msra.gmra.mrb[4].mxu1 %vm619_vm1, %v936_v47 }
 0x4b8   : > { %v1017_v52 = vpop.f32.mrb[4].mxu1 }
 0x4b9   : > { %v1018_v53 = vadd.f32 %v1421_v51, %v1017_v52  ;;  %v1515_v54 = vpop.f32.mrb[5].mxu1 }
 0x4bb   : > { %vm1021_vm4 = vcmp.ge.f32.partialorder %v1018_v53, 0.0  ;;  %v1022_v55 = vmul.f32 0.1, %v1018_v53 }
 0x4bd   : > { %v1023_v56 = vsel %vm1021_vm4, %v1018_v53, %v1022_v55 }
 0x4be   : > { %1525 = vmatmul.mubr.msk.f32.vlgmr.msra.gmra.mrb[4].mxu0 %vm619_vm1, %v1023_v56 }
 0x591   : > { %v1104_v58 = vpop.f32.mrb[4].mxu0 }
 0x592   : > { %v1105_v59 = vadd.f32 %v1423_v57, %v1104_v58  ;;  %v1526_v60 = vpop.f32.mrb[5].mxu0 }
 0x594   : > { %v1109_v61 = vmul.f32 0.1, %v1105_v59  ;;  %vm1108_vm5 = vcmp.ge.f32.partialorder %v1105_v59, 0.0 }
 0x596   : > { %v1110_v62 = vsel %vm1108_vm5, %v1105_v59, %v1109_v61 }
 0x597   : > { %v1114_v63 = vsel %vm1113_vm6, %v1110_v62, -inf }
 0x598   : > { %1115 = vmax.xlane.f32.xlu0 %v1114_v63 }
 0x625   : > { %v1116_v2 = vpop.xlane.xlu0 %1115 }
 0x626   : > { %vm1117_vm7 = vcmp.eq.f32.partialorder %v1110_v62, %v1116_v2 }
 0x627   : > { %v1118_v3 = vsel %vm1117_vm7, %v1112_v1, 4 }
 0x628   : > { %v1119_v4 = vsel %vm1113_vm6, %v1118_v3, 2147483647 }
 0x629   : > { %v1121_v5 = vshra.s32 %v1119_v4, 16  ;;  %v1120_v7 = vand.u32 65535, %v1119_v4 }
 0x62b   : > { %v1123_v6 = vcvt.s32.f32 %v1121_v5  ;;  %v1122_v9 = vcvt.s32.f32 %v1120_v7 }
 0x62d   : > { %1124 = vmin.xlane.f32.xlu0 %v1123_v6 }
 0x6ba   : > { %v1125_v8 = vpop.xlane.xlu0 %1124 }
 0x6bb   : > { %vm1126_vm8 = vcmp.eq.f32.partialorder %v1123_v6, %v1125_v8 }
 0x6bc   : > { %v1127_v10 = vsel %vm1126_vm8, %v1122_v9, inf }
 0x6bd   : > { %1128 = vmin.xlane.f32.xlu1 %v1127_v10 }
 0x6be   : > { %1716 = shalt.err (!%p1713_p9)
}
 0x6bf   : > { %s1717_s23 = scalar_lea.hbm %s2147_s21, 128  ;;  %s1721_s27 = scalar_lea.hbm %s2234_s10, 256 }
 0x6c0   : > { %p1718_p11 = scmp.ne.s32.totalorder %s2147_s21, %s1717_s23  ;;  %p1722_p4 = scmp.lt.u32.totalorder %s2147_s21, %s2234_s10 }
 0x6c1   : > { %p1723_p8 = scmp.lt.u32.totalorder %s1721_s27, %s1717_s23  ;;  %p1725_p5 = scmp.lt.u32.totalorder %s1717_s23, %s2147_s21 }
 0x6c2   : > { %p1719_p3 = pnand %p1718_p11, %p2258_p7 }
 0x6c3   : > { %p1724_p0 = por %p1723_p8, %p1722_p4 }
 0x6c4   : > { %p1720_p6 = pneg %p1719_p3 }
 0x6c5   : > { %p1726_p13 = por %p1725_p5, %p1724_p0 }
 0x6c7   : > { %p1727_p10 = pnand %p1726_p13, %p1720_p6 }
 0x6c9   : > { %1730 = shalt.err (!%p1727_p10)
}
 0x6ca   : > { %1564 = dma.vmem_to_hbm [thread:$0]  (%p2258_p7), %s1156_s0, 128, %s2147_s21, %s1136_s12   ;;  %v1131_v11 = vcvt.f32.s32 %v1125_v8 }
 0x6cb   : > { %s579_s14 = scalar_lea.vmem [#allocation8], %s2051_s15  ;;  %s2175_s19 = scalar_lea.hbm %s2235_s11, %s1427_s16 }
 0x6cc   : > { %s1169_s28 = sshll.u32 %s579_s14, 4  ;;  %v1132_v13 = vshll.u32 %v1131_v11, 16  ;;  %s1141_s21 = scalar_lea.sflag [#allocation9], %s2048_s24  ;;  %s2177_s28 = int_to_ptr.vmem [resolvable:$true] %s1169_s28 }
 0x6cd   : > { %s1731_s0 = scalar_lea.vmem %s2177_s28, 128  ;;  %s1831_s15 = smov [#allocation8]  }
 0x6ce   : > { %p1732_p12 = scmp.ne.s32.totalorder %s2177_s28, %s1731_s0  ;;  %s1735_s12 = sshll.u32 %s1831_s15, 4  ;;  %s1736_s12 = int_to_ptr.vmem [resolvable:$false] %s1735_s12 }
 0x6cf   : > { %s1737_s20 = scalar_lea.vmem %s1736_s12, 256  ;;  %p1738_p9 = scmp.lt.s32.totalorder %s2177_s28, %s1736_s12 }
 0x6d0   : > { %p1733_p1 = pnand %p1732_p12, %p2258_p7  ;;  %p1739_p11 = scmp.lt.s32.totalorder %s1737_s20, %s1731_s0 }
 0x6d2   : > { %p1734_p2 = pneg %p1733_p1  ;;  %p1740_p3 = por %p1739_p11, %p1738_p9 }
 0x6d4   : > { %p1741_p6 = pnand %p1740_p3, %p1734_p2 }
 0x74a   : > { %v1129_v12 = vpop.xlane.xlu1 %1128 }
 0x74b   : > { %v1130_v14 = vcvt.f32.s32 %v1129_v12 }
 0x74d   : > { %v1133_v15 = vadd.s32 %v1132_v13, %v1130_v14 }
 0x74f   : > { %1134 = vst [vmem:[%s579_s14] sm:$0xff] %v1133_v15 }
 0x750   : > { %1744 = shalt.err (!%p1741_p6)
}
 0x751   : > { %s1745_s24 = scalar_lea.hbm %s2175_s19, 128  ;;  %s1749_s27 = scalar_lea.hbm %s2235_s11, 256 }
 0x752   : > { %p1746_p4 = scmp.ne.s32.totalorder %s2175_s19, %s1745_s24  ;;  %p1750_p5 = scmp.lt.u32.totalorder %s2175_s19, %s2235_s11 }
 0x753   : > { %p1751_p13 = scmp.lt.u32.totalorder %s1749_s27, %s1745_s24  ;;  %p1753_p12 = scmp.lt.u32.totalorder %s1745_s24, %s2175_s19 }
 0x754   : > { %p1747_p8 = pnand %p1746_p4, %p2258_p7 }
 0x755   : > { %p1752_p10 = por %p1751_p13, %p1750_p5 }
 0x756   : > { %p1748_p0 = pneg %p1747_p8 }
 0x757   : > { %p1754_p1 = por %p1753_p12, %p1752_p10 }
 0x759   : > { %p1755_p2 = pnand %p1754_p1, %p1748_p0 }
 0x75b   : > { %1758 = shalt.err (!%p1755_p2)
}
 0x75c   : > { %1565 = dma.vmem_to_hbm [thread:$0]  (%p2258_p7), %s2177_s28, 128, %s2175_s19, %s1141_s21  }
 0x75d PF: > { %s2259_s14 = sld [smem:[#allocation18_spill]]  ;;  %s1181_s25 = sand.u32 1, %s1801_s17  }
 0x75e   : > { %p2261_p11 = scmp.ge.s32.totalorder %s1821_s22, 2  ;;  %s1182_s23 = scalar_lea.sflag [#allocation4], %s1181_s25 }
 0x763   : > { %p2260_p9 = scmp.ne.s32.totalorder %s2259_s14, 0 }
 0x765   : > { %p1576_p3 = pnand %p2261_p11, %p2260_p9 }
 0x767   : > { %1792 = dma.done.wait (!%p1576_p3), %s1182_s23, 128  }
 0x768   : > { %1794 = vsyncadd (!%p1576_p3), %s1182_s23, 4294967168  ;;  %s1191_s0 = scalar_lea.sflag [#allocation9], %s1181_s25 }
 0x769   : > { %1796 = dma.done.wait (!%p1576_p3), %s1191_s0, 128  }
 0x76a   : > { %1798 = vsyncadd (!%p1576_p3), %s1191_s0, 4294967168  ;;  %s34_s22 = sadd.s32 1, %s1821_s22   ;;  %s2262_s30 = sld [smem:[#allocation14_spill]] }
 0x76b   : > { %p31_p6 = scmp.ge.s32.totalorder %s34_s22, 4   ;;  %s2263_s19 = sld [smem:[#allocation17_spill]] }
 0x76c   : > { %s2264_s20 = sld [smem:[#allocation15_spill]]  ;;  %s2265_s21 = sld [smem:[#allocation16_spill]] }
 0x76d   : > { %s2266_s17 = smov %s1805_s18  ;;  %33 = sbr.rel (!%p31_p6) target bundleno = 12 (0xc), region = 159 }
 0x770   : > { %s2267_s18 = smov %s2262_s30 }
 0x774   :  { %1196 = vsyncpa [#allocation3], 1 }
 0x775   :  { %1198 = vsyncpa [#allocation3 + $0x1], 1 }
 0x776   :  { %1199 = vsyncpa [#allocation6], 1 }
 0x777   :  { %1201 = vsyncpa [#allocation6 + $0x1], 1 }
 0x778   :  { %1202 = vsyncpa [#allocation4], 1 }
 0x779   :  { %1204 = vsyncpa [#allocation4 + $0x1], 1 }
 0x77a   :  { %1205 = vsyncpa [#allocation9], 1 }
 0x77b   :  { %1207 = vsyncpa [#allocation9 + $0x1], 1 }

</bundles_post_ra>
